<compile_context>
chip_gen: v6e
topology: v6e:2x2x1
jax: 0.10.0
libtpu: 0.0.40
codegen_flags: <defaults>
</compile_context>

<pallas_src>
import jax
import jax.numpy as jnp
from jax.experimental import pallas as pl
from jax.experimental.pallas import tpu as pltpu


def _round_up(x, m):
    return (x + m - 1) // m * m


def _flexible_conditional_kernel(
    i_ref,    # VMEM (TB, I_DIM)         input dtype (e.g. f32)
    j_ref,    # VMEM (TB, J_DIM)         input dtype
    wfi_ref,  # VMEM (I_DIM, HID+OUT)    bf16  fused [hidden | a*linear] weights, i rows
    wfj_ref,  # VMEM (J_DIM, HID+OUT)    bf16  fused weights, j rows
    bxf_ref,  # VMEM (1, HID+OUT)        f32   fused bias [b1 | a*bl]
    w2_ref,   # VMEM (HID, OUT)          bf16  (1-a) * nonlinear layer-2 weight
    b2_ref,   # VMEM (1, OUT)            f32   (1-a) * layer-2 bias
    o_ref,    # VMEM (TB, OUT)           out dtype (bf16 by default)
):
    hid_dim = w2_ref.shape[0]

    # Fused x-side projection over the [hidden | alpha-scaled linear] columns,
    # computed as i @ Wf_i + j @ Wf_j so concat([i, j]) never materializes.
    # In-kernel cast to bf16 for the MXU; f32 accumulation.
    xw = (
        jnp.dot(i_ref[...].astype(jnp.bfloat16), wfi_ref[...],
                preferred_element_type=jnp.float32)
        + jnp.dot(j_ref[...].astype(jnp.bfloat16), wfj_ref[...],
                  preferred_element_type=jnp.float32)
        + bxf_ref[...]
    )                                                    # (TB, HID+OUT) f32

    h = jnp.maximum(xw[:, :hid_dim], 0.0)                # ReLU operand at lane 0
    linear_out = xw[:, hid_dim:]                         # already scaled by sigmoid(alpha)

    nonlinear_out = (
        jnp.dot(h.astype(jnp.bfloat16), w2_ref[...],
                preferred_element_type=jnp.float32)
        + b2_ref[...]
    )                                                    # (TB, OUT) f32, scaled by (1-a)

    o_ref[...] = (linear_out + nonlinear_out).astype(o_ref.dtype)


def _choose_batch_tile(B, block_rows):
    """Pick a batch tile that is a multiple of 8, <= block_rows, and (when the
    batch allows it) leaves >=2 grid steps so v7x megacore sharding has work."""
    rows = _round_up(max(B, 1), 8)
    half = max(8, _round_up(pl.cdiv(rows, 2), 8))
    return min(block_rows, half) if rows > 8 else min(block_rows, rows)


def _estimate_vmem_bytes(tb, i_dim, j_dim, fused, hid_dim, out_dim,
                         in_itemsize, out_itemsize):
    stream = 2 * tb * (i_dim * in_itemsize + j_dim * in_itemsize
                       + out_dim * out_itemsize)               # double-buffered tiles
    weights = 2 * ((i_dim + j_dim) * fused * 2 + fused * 4
                   + hid_dim * out_dim * 2 + out_dim * 4)
    interm = 2 * tb * (fused + out_dim) * 4                    # f32 intermediates + slack
    return stream + weights + interm


def flexible_conditional(i, j, params, *, block_rows=4096, out_dtype=jnp.bfloat16):
    """Pallas forward. i: (B, I_DIM), j: (B, J_DIM) -> (B, OUTPUT_DIM) in out_dtype."""
    B, i_dim = i.shape
    _, j_dim = j.shape
    out_dim = params["wl"].shape[1]
    hid_dim = params["w1"].shape[1]
    fused = hid_dim + out_dim

    # --- tiny one-off parameter prep (negligible, not streamed per row) -----
    a = jax.nn.sigmoid(params["alpha"].astype(jnp.float32))
    # Fuse [hidden | alpha-scaled linear] along the output axis and pre-split
    # per input operand so the kernel needs no concat and no blend.
    w_fused = jnp.concatenate([params["w1"], a * params["wl"]], axis=1)   # (I+J, HID+OUT)
    wfi = w_fused[:i_dim].astype(jnp.bfloat16)
    wfj = w_fused[i_dim:].astype(jnp.bfloat16)
    bxf = jnp.concatenate([params["b1"], a * params["bl"]], axis=1).astype(jnp.float32)
    w2 = ((1.0 - a) * params["w2"]).astype(jnp.bfloat16)
    b2 = ((1.0 - a) * params["b2"]).astype(jnp.float32)

    # --- batch tiling (no padding: ragged last block handled by Pallas) -----
    tb = _choose_batch_tile(B, block_rows)
    grid = (pl.cdiv(B, tb),)

    in_specs = [
        pl.BlockSpec((tb, i_dim), lambda b: (b, 0)),          # i tile (streamed)
        pl.BlockSpec((tb, j_dim), lambda b: (b, 0)),          # j tile (streamed)
        pl.BlockSpec((i_dim, fused), lambda b: (0, 0)),       # wfi (VMEM-resident)
        pl.BlockSpec((j_dim, fused), lambda b: (0, 0)),       # wfj (VMEM-resident)
        pl.BlockSpec((1, fused), lambda b: (0, 0)),           # bxf (resident)
        pl.BlockSpec((hid_dim, out_dim), lambda b: (0, 0)),   # w2  (resident)
        pl.BlockSpec((1, out_dim), lambda b: (0, 0)),         # b2  (resident)
    ]
    out_spec = pl.BlockSpec((tb, out_dim), lambda b: (b, 0))

    vmem_est = _estimate_vmem_bytes(
        tb, i_dim, j_dim, fused, hid_dim, out_dim,
        jnp.dtype(i.dtype).itemsize, jnp.dtype(out_dtype).itemsize)
    vmem_limit = int(min(max(2 * vmem_est + 8 * 2**20, 16 * 2**20), 48 * 2**20))

    return pl.pallas_call(
        _flexible_conditional_kernel,
        out_shape=jax.ShapeDtypeStruct((B, out_dim), out_dtype),
        grid=grid,
        in_specs=in_specs,
        out_specs=out_spec,
        compiler_params=pltpu.CompilerParams(
            dimension_semantics=("parallel",),   # shard batch tiles across v7x TCs
            vmem_limit_bytes=vmem_limit,
        ),
    )(i, j, wfi, wfj, bxf, w2, b2)


def init_params(key, input_dim, hidden_dim, output_dim):
    """Deterministic parameter init (mirrors nn.Linear shapes, stored transposed)."""
    ks = jax.random.split(key, 6)
    scale_in = 1.0 / jnp.sqrt(input_dim)
    scale_hid = 1.0 / jnp.sqrt(hidden_dim)
    return {
        "wl": jax.random.uniform(ks[0], (input_dim, output_dim), jnp.float32,
                                 -scale_in, scale_in),
        "bl": jax.random.uniform(ks[1], (1, output_dim), jnp.float32,
                                 -scale_in, scale_in),
        "w1": jax.random.uniform(ks[2], (input_dim, hidden_dim), jnp.float32,
                                 -scale_in, scale_in),
        "b1": jax.random.uniform(ks[3], (1, hidden_dim), jnp.float32,
                                 -scale_in, scale_in),
        "w2": jax.random.uniform(ks[4], (hidden_dim, output_dim), jnp.float32,
                                 -scale_hid, scale_hid),
        "b2": jax.random.uniform(ks[5], (1, output_dim), jnp.float32,
                                 -scale_hid, scale_hid),
        "alpha": jnp.array(0.5, jnp.float32),
    }


def reference(i, j, params):
    """Pure-JAX f32 reference of the PyTorch forward (correctness oracle)."""
    x = jnp.concatenate([i, j], axis=-1)
    linear_out = x @ params["wl"] + params["bl"]
    h = jnp.maximum(x @ params["w1"] + params["b1"], 0.0)
    nonlinear_out = h @ params["w2"] + params["b2"]
    a = jax.nn.sigmoid(params["alpha"])
    return a * linear_out + (1.0 - a) * nonlinear_out


if __name__ == "__main__":
    # Small shapes consistent with the module: i_dim + j_dim = input_dim.
    I_DIM, J_DIM = 16, 16
    INPUT_DIM = I_DIM + J_DIM      # 32
    HIDDEN_DIM = 32
    OUTPUT_DIM = 16

    key = jax.random.PRNGKey(0)
    k_i, k_j, k_p = jax.random.split(key, 3)
    params = init_params(k_p, INPUT_DIM, HIDDEN_DIM, OUTPUT_DIM)

    fn = jax.jit(flexible_conditional, static_argnames=("block_rows", "out_dtype"))

    # Case 1: tile-aligned batch.
    B = 8
    i = jax.random.normal(k_i, (B, I_DIM), jnp.float32)
    j = jax.random.normal(k_j, (B, J_DIM), jnp.float32)
    out = jax.block_until_ready(fn(i, j, params))
    ref = reference(i, j, params)
    assert out.shape == (B, OUTPUT_DIM)
    err = jnp.max(jnp.abs(out.astype(jnp.float32) - ref))
    assert jnp.allclose(out.astype(jnp.float32), ref, atol=5e-2, rtol=5e-2), (
        f"mismatch vs reference (aligned), max|err|={err}")

    # Case 2: ragged batch (exercises the masked partial last block, no padding).
    B2 = 20
    i2 = jax.random.normal(jax.random.fold_in(k_i, 1), (B2, I_DIM), jnp.float32)
    j2 = jax.random.normal(jax.random.fold_in(k_j, 1), (B2, J_DIM), jnp.float32)
    out2 = jax.block_until_ready(fn(i2, j2, params))
    ref2 = reference(i2, j2, params)
    assert out2.shape == (B2, OUTPUT_DIM)
    err2 = jnp.max(jnp.abs(out2.astype(jnp.float32) - ref2))
    assert jnp.allclose(out2.astype(jnp.float32), ref2, atol=5e-2, rtol=5e-2), (
        f"mismatch vs reference (ragged), max|err|={err2}")

    print("KERNEL_OK")
</pallas_src>

<mosaic_0001>
module attributes {stable_mosaic.version = 11 : i64} {
  func.func @_flexible_conditional_kernel(%arg0: i32, %arg1: memref<8x16xf32, #tpu.memory_space<vmem>>, %arg2: memref<8x16xf32, #tpu.memory_space<vmem>>, %arg3: memref<16x48xbf16, #tpu.memory_space<vmem>>, %arg4: memref<16x48xbf16, #tpu.memory_space<vmem>>, %arg5: memref<1x48xf32, #tpu.memory_space<vmem>>, %arg6: memref<32x16xbf16, #tpu.memory_space<vmem>>, %arg7: memref<1x16xf32, #tpu.memory_space<vmem>>, %arg8: memref<8x16xbf16, #tpu.memory_space<vmem>>) attributes {dimension_semantics = [#tpu.dimension_semantics<parallel>], iteration_bounds = array<i64: 1>, scalar_prefetch = 0 : i64, scratch_operands = 0 : i64, tpu.core_type = #tpu.core_type<tc>, window_params = [{transform_indices = @transform_0, window_bounds = array<i64: 8, 16>}, {transform_indices = @transform_1, window_bounds = array<i64: 8, 16>}, {pipeline_mode = #tpu.pipeline_mode<synchronous>, transform_indices = @transform_2, window_bounds = array<i64: 16, 48>}, {pipeline_mode = #tpu.pipeline_mode<synchronous>, transform_indices = @transform_3, window_bounds = array<i64: 16, 48>}, {pipeline_mode = #tpu.pipeline_mode<synchronous>, transform_indices = @transform_4, window_bounds = array<i64: 1, 48>}, {pipeline_mode = #tpu.pipeline_mode<synchronous>, transform_indices = @transform_5, window_bounds = array<i64: 32, 16>}, {pipeline_mode = #tpu.pipeline_mode<synchronous>, transform_indices = @transform_6, window_bounds = array<i64: 1, 16>}, {transform_indices = @transform_7, window_bounds = array<i64: 8, 16>}]} {
    %c0 = arith.constant 0 : index
    %c0_0 = arith.constant 0 : index
    %0 = vector.load %arg1[%c0, %c0_0] : memref<8x16xf32, #tpu.memory_space<vmem>>, vector<8x16xf32>
    %1 = arith.truncf %0 : vector<8x16xf32> to vector<8x16xbf16>
    %c0_1 = arith.constant 0 : index
    %c0_2 = arith.constant 0 : index
    %2 = vector.load %arg3[%c0_1, %c0_2] : memref<16x48xbf16, #tpu.memory_space<vmem>>, vector<16x48xbf16>
    %cst = arith.constant dense<0.000000e+00> : vector<8x48xf32>
    %3 = tpu.matmul %1, %2, %cst {dimension_numbers = #tpu.dot_dimension_numbers<[1], [0], [0], [1], [0, 0, 1, 1], [], []>} : vector<8x16xbf16>, vector<16x48xbf16>, vector<8x48xf32> -> vector<8x48xf32>
    %c0_3 = arith.constant 0 : index
    %c0_4 = arith.constant 0 : index
    %4 = vector.load %arg2[%c0_3, %c0_4] : memref<8x16xf32, #tpu.memory_space<vmem>>, vector<8x16xf32>
    %5 = arith.truncf %4 : vector<8x16xf32> to vector<8x16xbf16>
    %c0_5 = arith.constant 0 : index
    %c0_6 = arith.constant 0 : index
    %6 = vector.load %arg4[%c0_5, %c0_6] : memref<16x48xbf16, #tpu.memory_space<vmem>>, vector<16x48xbf16>
    %cst_7 = arith.constant dense<0.000000e+00> : vector<8x48xf32>
    %7 = tpu.matmul %5, %6, %cst_7 {dimension_numbers = #tpu.dot_dimension_numbers<[1], [0], [0], [1], [0, 0, 1, 1], [], []>} : vector<8x16xbf16>, vector<16x48xbf16>, vector<8x48xf32> -> vector<8x48xf32>
    %8 = arith.addf %3, %7 : vector<8x48xf32>
    %c0_8 = arith.constant 0 : index
    %c0_9 = arith.constant 0 : index
    %9 = vector.load %arg5[%c0_8, %c0_9] : memref<1x48xf32, #tpu.memory_space<vmem>>, vector<1x48xf32>
    %10 = vector.broadcast %9 : vector<1x48xf32> to vector<8x48xf32>
    %11 = arith.addf %8, %10 : vector<8x48xf32>
    %12 = vector.extract_strided_slice %11 {offsets = [0, 0], sizes = [8, 32], strides = [1, 1]} : vector<8x48xf32> to vector<8x32xf32>
    %cst_10 = arith.constant 0.000000e+00 : f32
    %13 = vector.broadcast %cst_10 : f32 to vector<8x32xf32>
    %14 = arith.maximumf %12, %13 : vector<8x32xf32>
    %15 = vector.extract_strided_slice %11 {offsets = [0, 32], sizes = [8, 16], strides = [1, 1]} : vector<8x48xf32> to vector<8x16xf32>
    %16 = arith.truncf %14 : vector<8x32xf32> to vector<8x32xbf16>
    %c0_11 = arith.constant 0 : index
    %c0_12 = arith.constant 0 : index
    %17 = vector.load %arg6[%c0_11, %c0_12] : memref<32x16xbf16, #tpu.memory_space<vmem>>, vector<32x16xbf16>
    %cst_13 = arith.constant dense<0.000000e+00> : vector<8x16xf32>
    %18 = tpu.matmul %16, %17, %cst_13 {dimension_numbers = #tpu.dot_dimension_numbers<[1], [0], [0], [1], [0, 0, 1, 1], [], []>} : vector<8x32xbf16>, vector<32x16xbf16>, vector<8x16xf32> -> vector<8x16xf32>
    %c0_14 = arith.constant 0 : index
    %c0_15 = arith.constant 0 : index
    %19 = vector.load %arg7[%c0_14, %c0_15] : memref<1x16xf32, #tpu.memory_space<vmem>>, vector<1x16xf32>
    %20 = vector.broadcast %19 : vector<1x16xf32> to vector<8x16xf32>
    %21 = arith.addf %18, %20 : vector<8x16xf32>
    %22 = arith.addf %15, %21 : vector<8x16xf32>
    %23 = arith.truncf %22 : vector<8x16xf32> to vector<8x16xbf16>
    %c0_16 = arith.constant 0 : index
    %c0_17 = arith.constant 0 : index
    %24 = vector.load %arg8[%c0_16, %c0_17] : memref<8x16xbf16, #tpu.memory_space<vmem>>, vector<8x16xbf16>
    tpu.vector_store %arg8[%c0_16, %c0_17], %23 {strides = array<i32>} : memref<8x16xbf16, #tpu.memory_space<vmem>>, vector<8x16xbf16>,
    return
  }
  func.func @transform_0(%arg0: i32) -> (i32, i32) {
    %c0_i32 = arith.constant 0 : i32
    %c0_i32_0 = arith.constant 0 : i32
    return %arg0, %c0_i32 : i32, i32
  }
  func.func @transform_1(%arg0: i32) -> (i32, i32) {
    %c0_i32 = arith.constant 0 : i32
    %c0_i32_0 = arith.constant 0 : i32
    return %arg0, %c0_i32 : i32, i32
  }
  func.func @transform_2(%arg0: i32) -> (i32, i32) {
    %c0_i32 = arith.constant 0 : i32
    %c0_i32_0 = arith.constant 0 : i32
    %c0_i32_1 = arith.constant 0 : i32
    return %c0_i32, %c0_i32_0 : i32, i32
  }
  func.func @transform_3(%arg0: i32) -> (i32, i32) {
    %c0_i32 = arith.constant 0 : i32
    %c0_i32_0 = arith.constant 0 : i32
    %c0_i32_1 = arith.constant 0 : i32
    return %c0_i32, %c0_i32_0 : i32, i32
  }
  func.func @transform_4(%arg0: i32) -> (i32, i32) {
    %c0_i32 = arith.constant 0 : i32
    %c0_i32_0 = arith.constant 0 : i32
    %c0_i32_1 = arith.constant 0 : i32
    return %c0_i32, %c0_i32_0 : i32, i32
  }
  func.func @transform_5(%arg0: i32) -> (i32, i32) {
    %c0_i32 = arith.constant 0 : i32
    %c0_i32_0 = arith.constant 0 : i32
    %c0_i32_1 = arith.constant 0 : i32
    return %c0_i32, %c0_i32_0 : i32, i32
  }
  func.func @transform_6(%arg0: i32) -> (i32, i32) {
    %c0_i32 = arith.constant 0 : i32
    %c0_i32_0 = arith.constant 0 : i32
    %c0_i32_1 = arith.constant 0 : i32
    return %c0_i32, %c0_i32_0 : i32, i32
  }
  func.func @transform_7(%arg0: i32) -> (i32, i32) {
    %c0_i32 = arith.constant 0 : i32
    %c0_i32_0 = arith.constant 0 : i32
    return %arg0, %c0_i32 : i32, i32
  }
}

</mosaic_0001>

<bundles_post_ra>
// kernel: flexible_conditional.1
= control target key start
LH: loop header
LB: loop body
LE: loop exit
PB: predicated region body
PF: predicated region fallthrough
CT: control target
= control target key end

     0   :  { %v309_v1 = vmov 0.0   ;;  %vm310_vm0 = vmmov 0   ;;  %vm42_vm1 = vcmask 130048   ;;  %s381_s0 = inlined_call_operand.vmem [shape: f32[8,16], index: 0, kind: input, shape index: {}]   ;;  %s382_s1 = inlined_call_operand.vmem [shape: f32[8,16], index: 1, kind: input, shape index: {}]   ;;  %s383_s2 = inlined_call_operand.vmem [shape: bf16[16,48], index: 2, kind: input, shape index: {}]   ;;  %s384_s3 = inlined_call_operand.vmem [shape: bf16[16,48], index: 3, kind: input, shape index: {}]   ;;  %s385_s4 = inlined_call_operand.vmem [shape: f32[1,48], index: 4, kind: input, shape index: {}]   ;;  %s386_s5 = inlined_call_operand.vmem [shape: bf16[32,16], index: 5, kind: input, shape index: {}]   ;;  %s387_s6 = inlined_call_operand.vmem [shape: f32[1,16], index: 6, kind: input, shape index: {}]   ;;  %s388_s7 = inlined_call_operand.hbm [shape: bf16[8,16], index: 7, kind: output, shape index: {}]  }
   0x1   :  { %v283_v0 = vld [vmem:[%s384_s3] sm:$0xff]   ;;  %258 = vmatprep.subr.bf16.mxu0 %v309_v1  ;;  %264 = vmatprep.subr.bf16.mxu1 %v309_v1 }
   0x2   :  { %v284_v2 = vld [vmem:[%s383_s2] sm:$0xff]   ;;  %259 = vmatpush3.bf16.msra.mxu0 %v283_v0  ;;  %260 = vmatprep.mubr.msk.bf16.mxu0 %vm310_vm0, %v309_v1 }
   0x3   :  { %v32_v3 = vld [vmem:[%s382_s1] sm:$0xff]  ;;  %265 = vmatpush3.bf16.msra.mxu1 %v284_v2  ;;  %266 = vmatprep.mubr.msk.bf16.mxu1 %vm310_vm0, %v309_v1 }
   0x4   :  { %v28_v4 = vld [vmem:[%s381_s0] sm:$0xff]  ;;  %v33_v5 = vpack.c.bf16 %v32_v3, %v32_v3  ;;  %270 = vmatprep.subr.bf16.mxu0 %v309_v1 }
   0x5   :  { %v29_v6 = vpack.c.bf16 %v28_v4, %v28_v4 }
   0x6   :  { %12 = vsyncpa [#allocation3], 0  ;;  %261 = vmatmul.mubr.msk.bf16.vlgmr.msra.gmra.mxu0 %vm42_vm1, %v33_v5  ;;  %v285_v7 = vld [vmem:[%s386_s5 + $0x8] sm:$0xff]   ;;  %v286_v8 = vld [vmem:[%s386_s5] sm:$0xff]   ;;  %vm168_vm2 = vcmask 261120   ;;  %s312_s12 = smov 96  }
   0x7   :  { %267 = vmatmul.mubr.msk.bf16.vlgmr.msra.gmra.mxu1 %vm42_vm1, %v29_v6  ;;  %274 = vmatprep.mubr.msk.bf16.mxu0 %vm310_vm0, %v309_v1  ;;  %v244_v11 = vld [vmem:[%s385_s4] ss:$0 sm:$0xff]  ;;  %s311_s4 = smov 32   ;;  %s313_s13 = smov [#allocation2]   ;;  %vm224_vm3 = vcmask 125952  }
   0x8   :  { %271 = vmatpush3.bf16.msra.mxu0 %v285_v7  ;;  %v245_v22 = vld [vmem:[%s387_s6] ss:$0 sm:$0xff]  ;;  %s232_s14 = sshll.u32 %s313_s13, 4  ;;  %s233_s14 = int_to_ptr.vmem [resolvable:$true] %s232_s14 }
   0x9   :  { %272 = vmatprep.subr.bf16.mxu0 %v309_v1  ;;  %s287_s15 = scalar_lea.vmem %s233_s14, 64  ;;  %p292_p1 = scmp.lt.s32.totalorder %s233_s14, %s233_s14 }
   0xa   :  { %p288_p0 = scmp.ne.s32.totalorder %s233_s14, %s287_s15  ;;  %p293_p2 = scmp.lt.s32.totalorder %s287_s15, %s287_s15 }
   0xc   :  { %273 = vmatpush3.bf16.msra.mxu0 %v286_v8  ;;  %p294_p3 = por %p293_p2, %p292_p1 }
   0xe   :  { %p295_p4 = pnand %p294_p3, %p288_p0 }
  0xc6   :  { %v80_v9 = vpop.f32.mrf.mxu0 }
  0xc7   :  { %v129_v10 = vpop.f32.mrf.mxu1 }
  0xc8   :  { %v130_v12 = vadd.f32 %v129_v10, %v80_v9  ;;  %v262_v13 = vpop.f32.mrf.mxu0 }
  0xc9   :  { %v268_v14 = vpop.f32.mrf.mxu1 }
  0xca   :  { %v142_v15 = vadd.f32 %v244_v11, %v130_v12  ;;  %v83_v16 = vpop.f32.mrf.mxu0 }
  0xcb   :  { %v132_v17 = vpop.f32.mrf.mxu1 }
  0xcc   :  { %v143_v18 = vmax.f32 %v142_v15, 0.0  ;;  %v263_v19 = vpop.f32.mrf.mxu0 }
  0xcd   :  { %v269_v20 = vpop.f32.mrf.mxu1 }
  0xce   :  { %v144_v21 = vpack.c.bf16 %v143_v18, %v143_v18 }
  0xd0   :  { %275 = vmatmul.mubr.msk.bf16.vlgmr.msra.gmra.mxu0 %vm168_vm2, %v144_v21 }
 0x190   :  { %v206_v23 = vpop.f32.mrf.mxu0 }
 0x191   :  { %v207_v24 = vadd.f32 %v245_v22, %v206_v23 }
 0x192   :  { %v276_v25 = vpop.f32.mrf.mxu0 }
 0x193   :  { %213 = vrot.lane.b32.xlu0 %v207_v24, %s311_s4 }
 0x194   :  { %v209_v26 = vpop.f32.mrf.mxu0 }
 0x196   :  { %v277_v27 = vpop.f32.mrf.mxu0 }
 0x205   :  { %v214_v28 = vpop.permute.xlu0 %213 }
 0x206   :  { %v216_v29 = vadd.f32 %v214_v28, %v142_v15 }
 0x208   :  { %v250_v30 = vpack.c.bf16 %v216_v29, %v216_v29 }
 0x20a   :  { %221 = vrot.lane.b32.xlu0 %v250_v30, %s312_s12 }
 0x27c   :  { %v222_v31 = vpop.permute.xlu0 %221 }
 0x27d   :  { %225 = vst.msk [vmem:[#allocation2] sm:$0xf] %vm224_vm3, %v222_v31 }
 0x27e   :  { %298 = shalt.err (!%p295_p4)
}
 0x27f   :  { %235 = dma.vmem_to_hbm [thread:$0]  %s233_s14, 64, %s388_s7, [#allocation3]  }
 0x280   :  { %307 = dma.done.wait [#allocation3], 64  }
 0x281   :  { %308 = vsyncadd [#allocation3], 4294967232 }
 0x282   :  { %239 = vsyncpa [#allocation3], 1 }

</bundles_post_ra>
